<compile_context>
chip_gen: v7x
topology: tpu7x:2x2x1
jax: 0.10.0
libtpu: 0.0.40
codegen_flags: <defaults>
</compile_context>

<pallas_src>
import numpy as np
import jax
import jax.numpy as jnp
from jax import lax
from jax.experimental import pallas as pl
from jax.experimental.pallas import tpu as pltpu

CONSTANT = 12.8            # unused in forward; kept for parity with the module buffers
TEMPERATURE = 2.0 / 3.0    # has no effect on the forward output (sign-preserving scale)
PRECISION = 3
BITRANK = (1, 2, 4)

_FIELD_BITS = 10                     # bits of randomness per mask bit
_FIELD_SIZE = 1 << _FIELD_BITS       # 1024
LANES = 1024                         # lane-dense last dim (multiple of 128)
MAX_BLOCK_ROWS = 256                 # 256 x 1024 f32 tile = 1 MiB per stream


def _make_dropit_kernel(thresholds):
    """thresholds: three python ints t_k = round((1 - p_k) * 2**_FIELD_BITS)."""
    t0, t1, t2 = (int(t) for t in thresholds)

    def kernel(x_ref, r_ref, o_ref):
        x = x_ref[...]                                   # (bm, LANES) activations
        r = r_ref[...]                                   # (bm, LANES) int32 random words

        # Three independent uniform fields from disjoint bit ranges of one word.
        f0 = r & (_FIELD_SIZE - 1)
        f1 = (r >> _FIELD_BITS) & (_FIELD_SIZE - 1)
        f2 = (r >> (2 * _FIELD_BITS)) & (_FIELD_SIZE - 1)

        # bit_k = 1 with probability p_k   (u >= 1 - p_k)
        b0 = (f0 >= t0).astype(jnp.int32)
        b1 = (f1 >= t1).astype(jnp.int32)
        b2 = (f2 >= t2).astype(jnp.int32)

        # sum(bit_k * bitrank[k]) with bitrank = [1, 2, 4]  ->  shift/OR, no mul.
        mask = b0 | (b1 << 1) | (b2 << 2)                # in [0, 7]

        # MyXOR.forward: round(x) -> uint8, xor, cast back.  (& 0xFF emulates the
        # uint8 wrap; intended regime is non-negative quantized/ReLU6 activations.)
        x_int = jnp.round(x.astype(jnp.float32)).astype(jnp.int32) & 0xFF
        o_ref[...] = jnp.bitwise_xor(x_int, mask).astype(o_ref.dtype)

    return kernel


def dropit_forward(x, dropitp, key):
    """x: any-shape float array (native dtype kept). dropitp: (3,) concrete probs.
    key: jax PRNG key for the mask randomness. Returns array like x."""
    orig_shape = x.shape
    orig_dtype = x.dtype
    total = int(np.prod(orig_shape))

    # Lane-dense slab: (rows_padded, LANES), last dim multiple of 128.
    rows = pl.cdiv(total, LANES)
    block_rows = min(MAX_BLOCK_ROWS, rows)
    rows_padded = block_rows * pl.cdiv(rows, block_rows)
    padded_total = rows_padded * LANES

    xf = jnp.ravel(x)
    if padded_total != total:
        xf = jnp.pad(xf, (0, padded_total - total))
    xf = xf.reshape(rows_padded, LANES)

    # One uint32 word per element; view as int32 (fields are masked, sign irrelevant).
    rbits = jax.random.bits(key, (rows_padded, LANES), dtype=jnp.uint32)
    rbits = lax.bitcast_convert_type(rbits, jnp.int32)

    # Integer thresholds t_k = (1 - p_k) * 2^10, computed once in the glue.
    p = np.asarray(jax.device_get(dropitp), dtype=np.float64)
    thresholds = np.clip(np.rint((1.0 - p) * _FIELD_SIZE), 0, _FIELD_SIZE).astype(np.int64)

    grid = (rows_padded // block_rows,)
    out = pl.pallas_call(
        _make_dropit_kernel(thresholds),
        out_shape=jax.ShapeDtypeStruct((rows_padded, LANES), orig_dtype),
        grid=grid,
        in_specs=[
            pl.BlockSpec((block_rows, LANES), lambda i: (i, 0)),   # activations
            pl.BlockSpec((block_rows, LANES), lambda i: (i, 0)),   # random words
        ],
        out_specs=pl.BlockSpec((block_rows, LANES), lambda i: (i, 0)),
        compiler_params=pltpu.CompilerParams(
            dimension_semantics=("parallel",),
        ),
    )(xf, rbits)

    return out.reshape(-1)[:total].reshape(orig_shape)


# TODO(synk): backward (straight-through XOR_GRADS sign gradient) not implemented;
# forward only, matching the module's inference behavior.


if __name__ == "__main__":
    key = jax.random.PRNGKey(0)
    kx, kmask = jax.random.split(key)

    # Inputs like quantized / ReLU6 activations (the regime the module targets):
    # small non-negative integers, NCHW layout.
    x = jnp.round(jax.random.uniform(kx, (2, 4, 16, 16), jnp.float32, 0.0, 6.0))

    # Deterministic parameter init per Dropit.__init__: dropitp = [0.01] * precision.
    dropitp = jnp.full((PRECISION,), 0.01, dtype=jnp.float32)

    out = dropit_forward(x, dropitp, kmask)
    out = jax.block_until_ready(out)

    # Sanity: shape/dtype preserved; out ^ round(x) must be a 3-bit mask in [0, 7].
    assert out.shape == x.shape and out.dtype == x.dtype
    diff = np.bitwise_xor(
        np.asarray(out).astype(np.int64), np.round(np.asarray(x)).astype(np.int64)
    )
    assert diff.min() >= 0 and diff.max() <= 7
    print("KERNEL_OK")
</pallas_src>

<mosaic_0001>
module attributes {stable_mosaic.version = 11 : i64} {
  func.func @kernel(%arg0: i32, %arg1: memref<2x1024xf32, #tpu.memory_space<vmem>>, %arg2: memref<2x1024xi32, #tpu.memory_space<vmem>>, %arg3: memref<2x1024xf32, #tpu.memory_space<vmem>>) attributes {dimension_semantics = [#tpu.dimension_semantics<parallel>], iteration_bounds = array<i64: 1>, scalar_prefetch = 0 : i64, scratch_operands = 0 : i64, tpu.core_type = #tpu.core_type<tc>, window_params = [{transform_indices = @transform_0, window_bounds = array<i64: 2, 1024>}, {transform_indices = @transform_1, window_bounds = array<i64: 2, 1024>}, {transform_indices = @transform_2, window_bounds = array<i64: 2, 1024>}]} {
    %c0 = arith.constant 0 : index
    %c0_0 = arith.constant 0 : index
    %0 = vector.load %arg1[%c0, %c0_0] : memref<2x1024xf32, #tpu.memory_space<vmem>>, vector<2x1024xf32>
    %c0_1 = arith.constant 0 : index
    %c0_2 = arith.constant 0 : index
    %1 = vector.load %arg2[%c0_1, %c0_2] : memref<2x1024xi32, #tpu.memory_space<vmem>>, vector<2x1024xi32>
    %c1023_i32 = arith.constant 1023 : i32
    %2 = vector.broadcast %c1023_i32 : i32 to vector<2x1024xi32>
    %3 = arith.andi %1, %2 : vector<2x1024xi32>
    %c10_i32 = arith.constant 10 : i32
    %4 = vector.broadcast %c10_i32 : i32 to vector<2x1024xi32>
    %5 = arith.shrsi %1, %4 : vector<2x1024xi32>
    %c1023_i32_3 = arith.constant 1023 : i32
    %6 = vector.broadcast %c1023_i32_3 : i32 to vector<2x1024xi32>
    %7 = arith.andi %5, %6 : vector<2x1024xi32>
    %c20_i32 = arith.constant 20 : i32
    %8 = vector.broadcast %c20_i32 : i32 to vector<2x1024xi32>
    %9 = arith.shrsi %1, %8 : vector<2x1024xi32>
    %c1023_i32_4 = arith.constant 1023 : i32
    %10 = vector.broadcast %c1023_i32_4 : i32 to vector<2x1024xi32>
    %11 = arith.andi %9, %10 : vector<2x1024xi32>
    %c1014_i32 = arith.constant 1014 : i32
    %12 = vector.broadcast %c1014_i32 : i32 to vector<2x1024xi32>
    %13 = arith.cmpi sge, %3, %12 : vector<2x1024xi32>
    %14 = arith.extui %13 : vector<2x1024xi1> to vector<2x1024xi32>
    %c1014_i32_5 = arith.constant 1014 : i32
    %15 = vector.broadcast %c1014_i32_5 : i32 to vector<2x1024xi32>
    %16 = arith.cmpi sge, %7, %15 : vector<2x1024xi32>
    %17 = arith.extui %16 : vector<2x1024xi1> to vector<2x1024xi32>
    %c1014_i32_6 = arith.constant 1014 : i32
    %18 = vector.broadcast %c1014_i32_6 : i32 to vector<2x1024xi32>
    %19 = arith.cmpi sge, %11, %18 : vector<2x1024xi32>
    %20 = arith.extui %19 : vector<2x1024xi1> to vector<2x1024xi32>
    %c1_i32 = arith.constant 1 : i32
    %21 = vector.broadcast %c1_i32 : i32 to vector<2x1024xi32>
    %22 = arith.shli %17, %21 : vector<2x1024xi32>
    %23 = arith.ori %14, %22 : vector<2x1024xi32>
    %c2_i32 = arith.constant 2 : i32
    %24 = vector.broadcast %c2_i32 : i32 to vector<2x1024xi32>
    %25 = arith.shli %20, %24 : vector<2x1024xi32>
    %26 = arith.ori %23, %25 : vector<2x1024xi32>
    %27 = math.roundeven %0 : vector<2x1024xf32>
    %28 = arith.fptosi %27 : vector<2x1024xf32> to vector<2x1024xi32>
    %c255_i32 = arith.constant 255 : i32
    %29 = vector.broadcast %c255_i32 : i32 to vector<2x1024xi32>
    %30 = arith.andi %28, %29 : vector<2x1024xi32>
    %31 = arith.xori %30, %26 : vector<2x1024xi32>
    %32 = arith.sitofp %31 : vector<2x1024xi32> to vector<2x1024xf32>
    %c0_7 = arith.constant 0 : index
    %c0_8 = arith.constant 0 : index
    %33 = vector.load %arg3[%c0_7, %c0_8] : memref<2x1024xf32, #tpu.memory_space<vmem>>, vector<2x1024xf32>
    tpu.vector_store %arg3[%c0_7, %c0_8], %32 {strides = array<i32>} : memref<2x1024xf32, #tpu.memory_space<vmem>>, vector<2x1024xf32>,
    return
  }
  func.func @transform_0(%arg0: i32) -> (i32, i32) {
    %c0_i32 = arith.constant 0 : i32
    %c0_i32_0 = arith.constant 0 : i32
    return %arg0, %c0_i32 : i32, i32
  }
  func.func @transform_1(%arg0: i32) -> (i32, i32) {
    %c0_i32 = arith.constant 0 : i32
    %c0_i32_0 = arith.constant 0 : i32
    return %arg0, %c0_i32 : i32, i32
  }
  func.func @transform_2(%arg0: i32) -> (i32, i32) {
    %c0_i32 = arith.constant 0 : i32
    %c0_i32_0 = arith.constant 0 : i32
    return %arg0, %c0_i32 : i32, i32
  }
}

</mosaic_0001>

<bundles_post_ra>
// kernel: tpu_custom_call.1
= control target key start
LH: loop header
LB: loop body
LE: loop exit
PB: predicated region body
PF: predicated region fallthrough
CT: control target
= control target key end

     0   :  { %7 = vsyncpa [#allocation3], 0  ;;  %s233_s0 = inlined_call_operand.hbm [shape: f32[2,1024], index: 0, kind: input, shape index: {}]   ;;  %s234_s1 = inlined_call_operand.hbm [shape: s32[2,1024], index: 1, kind: input, shape index: {}]   ;;  %s235_s2 = inlined_call_operand.hbm [shape: f32[2,1024], index: 2, kind: output, shape index: {}]  }
   0x1   :  { %8 = vsyncpa [#allocation6], 0 }
   0x2   :  { %9 = vsyncpa [#allocation4], 0  ;;  %s178_s9 = smov [#allocation2]   ;;  %s179_s11 = smov [#allocation5]  }
   0x3   :  { %s16_s10 = sshll.u32 %s178_s9, 4  ;;  %s26_s12 = sshll.u32 %s179_s11, 4  ;;  %s17_s10 = int_to_ptr.vmem [resolvable:$true] %s16_s10  ;;  %s27_s12 = int_to_ptr.vmem [resolvable:$true] %s26_s12 }
   0x4   :  { %s106_s15 = scalar_lea.hbm %s233_s0, 256 }
   0x5   :  { %p107_p0 = scmp.ne.s32.totalorder %s233_s0, %s106_s15  ;;  %p110_p1 = scmp.lt.u32.totalorder %s106_s15, %s233_s0 }
   0x7   :  { %p112_p2 = pnand %p110_p1, %p107_p0 }
   0x9   :  { %115 = shalt.err (!%p112_p2)
}
   0xa   :  { %s116_s20 = scalar_lea.vmem %s17_s10, 256  ;;  %p121_p4 = scmp.lt.s32.totalorder %s17_s10, %s17_s10 }
   0xb   :  { %p117_p3 = scmp.ne.s32.totalorder %s17_s10, %s116_s20  ;;  %p122_p5 = scmp.lt.s32.totalorder %s116_s20, %s116_s20 }
   0xd   :  { %p123_p6 = por %p122_p5, %p121_p4 }
   0xf   :  { %p124_p7 = pnand %p123_p6, %p117_p3 }
  0x11   :  { %127 = shalt.err (!%p124_p7)
}
  0x12   :  { %19 = dma.hbm_to_vmem [thread:$0]  %s233_s0, 256, %s17_s10, [#allocation3]  }
  0x13   :  { %s128_s25 = scalar_lea.hbm %s234_s1, 256 }
  0x14   :  { %p129_p8 = scmp.ne.s32.totalorder %s234_s1, %s128_s25  ;;  %p132_p9 = scmp.lt.u32.totalorder %s128_s25, %s234_s1 }
  0x16   :  { %p134_p10 = pnand %p132_p9, %p129_p8 }
  0x18   :  { %137 = shalt.err (!%p134_p10)
}
  0x19   :  { %s138_s30 = scalar_lea.vmem %s27_s12, 256  ;;  %p143_p12 = scmp.lt.s32.totalorder %s27_s12, %s27_s12 }
  0x1a   :  { %p139_p11 = scmp.ne.s32.totalorder %s27_s12, %s138_s30  ;;  %p144_p13 = scmp.lt.s32.totalorder %s138_s30, %s138_s30 }
  0x1c   :  { %p145_p0 = por %p144_p13, %p143_p12 }
  0x1e   :  { %p146_p1 = pnand %p145_p0, %p139_p11 }
  0x20   :  { %149 = shalt.err (!%p146_p1)
}
  0x21   :  { %29 = dma.hbm_to_vmem [thread:$0]  %s234_s1, 256, %s27_s12, [#allocation6]  }
  0x22   :  { %172 = dma.done.wait [#allocation3], 256  }
  0x23   :  { %173 = vsyncadd [#allocation3], 4294967040 }
  0x24   :  { %174 = dma.done.wait [#allocation6], 256  }
  0x25   :  { %175 = vsyncadd [#allocation6], 4294967040  ;;  %v36_v0 = vld [vmem:[#allocation2] sm:$0xff]  ;;  %v38_v1 = vld [vmem:[#allocation5] sm:$0xff]  ;;  %v180_v16 = vmov 0   ;;  %s181_s1 = smov [#allocation7]  }
  0x26   :  { %v40_v2 = vand.u32 1023, %v38_v1  ;;  %v42_v3 = vshra.s32 %v38_v1, 10  ;;  %v46_v4 = vshra.s32 %v38_v1, 20  ;;  %v37_v5 = vld [vmem:[#allocation2 + $0x8] sm:$0xff]  ;;  %v39_v6 = vld [vmem:[#allocation5 + $0x8] sm:$0xff]  ;;  %v98_v12 = vcvt.f32.s32 %v36_v0  ;;  %s86_s4 = sshll.u32 %s181_s1, 4  ;;  %s87_s4 = int_to_ptr.vmem [resolvable:$true] %s86_s4 }
  0x27   :  { %v41_v7 = vand.u32 1023, %v39_v6  ;;  %v43_v8 = vshra.s32 %v39_v6, 10  ;;  %v47_v9 = vshra.s32 %v39_v6, 20  ;;  %v101_v15 = vcvt.f32.s32 %v37_v5  ;;  %s150_s5 = scalar_lea.vmem %s87_s4, 256  ;;  %p155_p3 = scmp.lt.s32.totalorder %s87_s4, %s87_s4 }
  0x28   :  { %v44_v10 = vand.u32 1023, %v42_v3  ;;  %v48_v11 = vand.u32 1023, %v46_v4  ;;  %vm50_vm0 = vcmp.ge.s32.totalorder %v40_v2, 1014  ;;  %v72_v28 = vand.u32 255, %v98_v12  ;;  %p151_p2 = scmp.ne.s32.totalorder %s87_s4, %s150_s5  ;;  %p156_p4 = scmp.lt.s32.totalorder %s150_s5, %s150_s5 }
  0x29   :  { %v45_v13 = vand.u32 1023, %v43_v8  ;;  %v49_v14 = vand.u32 1023, %v47_v9  ;;  %vm51_vm1 = vcmp.ge.s32.totalorder %v41_v7, 1014  ;;  %v52_v17 = vsel %vm50_vm0, 1, %v180_v16 }
  0x2a   :  { %vm54_vm2 = vcmp.ge.s32.totalorder %v44_v10, 1014  ;;  %vm58_vm3 = vcmp.ge.s32.totalorder %v48_v11, 1014  ;;  %v53_v18 = vsel %vm51_vm1, 1, %v180_v16  ;;  %v73_v30 = vand.u32 255, %v101_v15  ;;  %p157_p5 = por %p156_p4, %p155_p3 }
  0x2b   :  { %v56_v19 = vsel %vm54_vm2, 1, %v180_v16  ;;  %v60_v20 = vsel %vm58_vm3, 1, %v180_v16  ;;  %vm55_vm4 = vcmp.ge.s32.totalorder %v45_v13, 1014  ;;  %vm59_vm5 = vcmp.ge.s32.totalorder %v49_v14, 1014 }
  0x2c   :  { %v62_v21 = vshll.u32 %v56_v19, 1  ;;  %v66_v22 = vshll.u32 %v60_v20, 2  ;;  %v57_v23 = vsel %vm55_vm4, 1, %v180_v16  ;;  %v61_v24 = vsel %vm59_vm5, 1, %v180_v16  ;;  %p158_p6 = pnand %p157_p5, %p151_p2 }
  0x2d   :  { %v63_v25 = vshll.u32 %v57_v23, 1  ;;  %v67_v26 = vshll.u32 %v61_v24, 2 }
  0x2e   :  { %v64_v27 = vor.u32 %v62_v21, %v52_v17 }
  0x2f   :  { %v65_v29 = vor.u32 %v63_v25, %v53_v18 }
  0x30   :  { %v68_v31 = vor.u32 %v66_v22, %v64_v27 }
  0x31   :  { %v69_v32 = vor.u32 %v67_v26, %v65_v29 }
  0x32   :  { %v74_v33 = vxor.u32 %v72_v28, %v68_v31 }
  0x33   :  { %v75_v34 = vxor.u32 %v73_v30, %v69_v32 }
  0x34   :  { %v76_v35 = vcvt.s32.f32 %v74_v33 }
  0x35   :  { %v77_v36 = vcvt.s32.f32 %v75_v34 }
  0x36   :  { %78 = vst [vmem:[#allocation7] sm:$0xff] %v76_v35 }
  0x37   :  { %79 = vst [vmem:[#allocation7 + $0x8] sm:$0xff] %v77_v36 }
  0x38   :  { %161 = shalt.err (!%p158_p6)
}
  0x39   :  { %s162_s8 = scalar_lea.hbm %s235_s2, 256 }
  0x3a   :  { %p163_p7 = scmp.ne.s32.totalorder %s235_s2, %s162_s8  ;;  %p166_p8 = scmp.lt.u32.totalorder %s162_s8, %s235_s2 }
  0x3c   :  { %p168_p9 = pnand %p166_p8, %p163_p7 }
  0x3e   :  { %171 = shalt.err (!%p168_p9)
}
  0x3f   :  { %89 = dma.vmem_to_hbm [thread:$0]  %s87_s4, 256, %s235_s2, [#allocation4]  }
  0x40   :  { %176 = dma.done.wait [#allocation4], 256  }
  0x41   :  { %177 = vsyncadd [#allocation4], 4294967040 }
  0x42   :  { %93 = vsyncpa [#allocation3], 1 }
  0x43   :  { %94 = vsyncpa [#allocation6], 1 }
  0x44   :  { %95 = vsyncpa [#allocation4], 1 }

</bundles_post_ra>
